<compile_context>
chip_gen: v7x
topology: tpu7x:2x2x1
jax: 0.10.0
libtpu: 0.0.40
codegen_flags: <defaults>
</compile_context>

<pallas_src>
import functools

import jax
import jax.numpy as jnp
from jax.experimental import pallas as pl
from jax.experimental.pallas import tpu as pltpu

IN1, OUT1 = 10, 10     # l1: Linear(10, 10)
IN2, OUT2 = 10, 100    # l2: Linear(10, 100)

TM_CAP = 4096          # max batch-tile rows per grid step (per-step out ~1.6 MiB f32)
TM_SPLIT = 2048        # min rows/step worth splitting across v7x's 2 TensorCores


def _round_up(n: int, m: int) -> int:
    return ((n + m - 1) // m) * m


def _choose_tm(B: int) -> int:
    """Batch tile (multiple of 8) that minimizes row-padding waste, keeps the
    per-step output DMA >= ~1 MiB, and yields >=2 grid steps for large B so the
    'parallel' grid axis actually uses both v7x TensorCores."""
    nsteps = pl.cdiv(B, TM_CAP)
    if nsteps == 1 and B >= 2 * TM_SPLIT:
        nsteps = 2
    return _round_up(pl.cdiv(B, nsteps), 8)


def _toy_kernel(x_ref, w_ref, b_ref, o_ref):
    # Single folded affine layer: [TM, 10] @ [10, 100] + [1, 100] -> [TM, 100]
    y = jnp.dot(x_ref[...], w_ref[...], preferred_element_type=jnp.float32)
    o_ref[...] = (y + b_ref[...]).astype(o_ref.dtype)


@functools.partial(jax.jit, static_argnames=("out_dtype",))
def toy_model_forward(x, w1, b1, w2, b2, *, out_dtype=None):
    """x: [B, 10] float32. w1: [10,10], b1: [10], w2: [100,10], b2: [100]
    (PyTorch [out, in] weight convention). Returns [B, 100] in out_dtype
    (defaults to x.dtype)."""
    B = x.shape[0]
    out_dtype = x.dtype if out_dtype is None else out_dtype

    # --- fold the two affine layers (exact; no nonlinearity between them) ---
    #   y = (x @ W1.T + b1) @ W2.T + b2 = x @ W_eff + b_eff
    w_eff = (w1.T @ w2.T).astype(jnp.float32)            # [10, 100]
    b_eff = (b1 @ w2.T + b2).reshape(1, OUT2)             # [1, 100]

    # --- batch tiling: tile rows multiple of 8, pad B up to a whole grid -----
    tm = _choose_tm(B)
    Bp = _round_up(B, tm)
    if Bp != B:
        x = jnp.pad(x, ((0, Bp - B), (0, 0)))
    grid = (Bp // tm,)

    flops = 2 * Bp * IN1 * OUT2
    bytes_accessed = (4 * (Bp * IN1 + IN1 * OUT2 + OUT2)
                      + jnp.dtype(out_dtype).itemsize * Bp * OUT2)

    out = pl.pallas_call(
        _toy_kernel,
        out_shape=jax.ShapeDtypeStruct((Bp, OUT2), out_dtype),
        grid=grid,
        in_specs=[
            pl.BlockSpec((tm, IN1), lambda i: (i, 0)),       # x tile (double-buffered)
            pl.BlockSpec((IN1, OUT2), lambda i: (0, 0)),     # W_eff (VMEM-resident)
            pl.BlockSpec((1, OUT2), lambda i: (0, 0)),       # b_eff (VMEM-resident)
        ],
        out_specs=pl.BlockSpec((tm, OUT2), lambda i: (i, 0)),
        compiler_params=pltpu.CompilerParams(
            dimension_semantics=("parallel",)),              # megacore on v7x
        cost_estimate=pl.CostEstimate(
            flops=flops, transcendentals=0, bytes_accessed=bytes_accessed),
    )(x, w_eff, b_eff)

    if Bp != B:
        out = out[:B]        # row-only slice; no column slice needed anymore
    return out


def _init_linear(key, out_features, in_features):
    # Deterministic init mimicking nn.Linear default: U(-1/sqrt(fan_in), +1/sqrt(fan_in))
    kw, kb = jax.random.split(key)
    bound = 1.0 / (in_features ** 0.5)
    w = jax.random.uniform(kw, (out_features, in_features), jnp.float32,
                           minval=-bound, maxval=bound)
    b = jax.random.uniform(kb, (out_features,), jnp.float32,
                           minval=-bound, maxval=bound)
    return w, b


if __name__ == "__main__":
    key = jax.random.PRNGKey(0)
    k_x, k_x2, k_l1, k_l2 = jax.random.split(key, 4)

    w1, b1 = _init_linear(k_l1, OUT1, IN1)    # l1 = Linear(10, 10)
    w2, b2 = _init_linear(k_l2, OUT2, IN2)    # l2 = Linear(10, 100)

    # Primary check: B that fits a single tile exactly.
    B = 8
    x = jax.random.normal(k_x, (B, IN1), jnp.float32)
    out = jax.block_until_ready(toy_model_forward(x, w1, b1, w2, b2))
    ref = (x @ w1.T + b1) @ w2.T + b2
    assert out.shape == (B, OUT2)
    assert jnp.allclose(out, ref, atol=1e-4, rtol=1e-4)

    # Secondary check: batch not a multiple of 8 (exercises row padding + slice).
    B2 = 20
    x2 = jax.random.normal(k_x2, (B2, IN1), jnp.float32)
    out2 = jax.block_until_ready(toy_model_forward(x2, w1, b1, w2, b2))
    ref2 = (x2 @ w1.T + b1) @ w2.T + b2
    assert out2.shape == (B2, OUT2)
    assert jnp.allclose(out2, ref2, atol=1e-4, rtol=1e-4)

    print("KERNEL_OK")
</pallas_src>

<mosaic_0001>
module attributes {stable_mosaic.version = 11 : i64} {
  func.func @_toy_kernel(%arg0: i32, %arg1: memref<8x10xf32, #tpu.memory_space<vmem>>, %arg2: memref<10x100xf32, #tpu.memory_space<vmem>>, %arg3: memref<1x100xf32, #tpu.memory_space<vmem>>, %arg4: memref<8x100xf32, #tpu.memory_space<vmem>>) attributes {dimension_semantics = [#tpu.dimension_semantics<parallel>], iteration_bounds = array<i64: 1>, scalar_prefetch = 0 : i64, scratch_operands = 0 : i64, tpu.core_type = #tpu.core_type<tc>, window_params = [{transform_indices = @transform_0, window_bounds = array<i64: 8, 10>}, {pipeline_mode = #tpu.pipeline_mode<synchronous>, transform_indices = @transform_1, window_bounds = array<i64: 10, 100>}, {pipeline_mode = #tpu.pipeline_mode<synchronous>, transform_indices = @transform_2, window_bounds = array<i64: 1, 100>}, {transform_indices = @transform_3, window_bounds = array<i64: 8, 100>}]} {
    %c0 = arith.constant 0 : index
    %c0_0 = arith.constant 0 : index
    %0 = vector.load %arg1[%c0, %c0_0] : memref<8x10xf32, #tpu.memory_space<vmem>>, vector<8x10xf32>
    %c0_1 = arith.constant 0 : index
    %c0_2 = arith.constant 0 : index
    %1 = vector.load %arg2[%c0_1, %c0_2] : memref<10x100xf32, #tpu.memory_space<vmem>>, vector<10x100xf32>
    %cst = arith.constant dense<0.000000e+00> : vector<8x100xf32>
    %2 = tpu.matmul %0, %1, %cst {dimension_numbers = #tpu.dot_dimension_numbers<[1], [0], [0], [1], [0, 0, 1, 1], [], []>} : vector<8x10xf32>, vector<10x100xf32>, vector<8x100xf32> -> vector<8x100xf32>
    %c0_3 = arith.constant 0 : index
    %c0_4 = arith.constant 0 : index
    %3 = vector.load %arg3[%c0_3, %c0_4] : memref<1x100xf32, #tpu.memory_space<vmem>>, vector<1x100xf32>
    %4 = vector.broadcast %3 : vector<1x100xf32> to vector<8x100xf32>
    %5 = arith.addf %2, %4 : vector<8x100xf32>
    %c0_5 = arith.constant 0 : index
    %c0_6 = arith.constant 0 : index
    %6 = vector.load %arg4[%c0_5, %c0_6] : memref<8x100xf32, #tpu.memory_space<vmem>>, vector<8x100xf32>
    tpu.vector_store %arg4[%c0_5, %c0_6], %5 {strides = array<i32>} : memref<8x100xf32, #tpu.memory_space<vmem>>, vector<8x100xf32>,
    return
  }
  func.func @transform_0(%arg0: i32) -> (i32, i32) {
    %c0_i32 = arith.constant 0 : i32
    %c0_i32_0 = arith.constant 0 : i32
    return %arg0, %c0_i32 : i32, i32
  }
  func.func @transform_1(%arg0: i32) -> (i32, i32) {
    %c0_i32 = arith.constant 0 : i32
    %c0_i32_0 = arith.constant 0 : i32
    %c0_i32_1 = arith.constant 0 : i32
    return %c0_i32, %c0_i32_0 : i32, i32
  }
  func.func @transform_2(%arg0: i32) -> (i32, i32) {
    %c0_i32 = arith.constant 0 : i32
    %c0_i32_0 = arith.constant 0 : i32
    %c0_i32_1 = arith.constant 0 : i32
    return %c0_i32, %c0_i32_0 : i32, i32
  }
  func.func @transform_3(%arg0: i32) -> (i32, i32) {
    %c0_i32 = arith.constant 0 : i32
    %c0_i32_0 = arith.constant 0 : i32
    return %arg0, %c0_i32 : i32, i32
  }
}

</mosaic_0001>

<bundles_post_ra>
// kernel: toy_model_forward.1
= control target key start
LH: loop header
LB: loop body
LE: loop exit
PB: predicated region body
PF: predicated region fallthrough
CT: control target
= control target key end

     0   :  { %vm29_vm0 = vcmask 1041408   ;;  %v165_v2 = vmov 0.0|0.0   ;;  %vm166_vm1 = vmmov 1   ;;  %vm167_vm3 = vmmov 0   ;;  %s214_s0 = inlined_call_operand.vmem [shape: f32[8,10], index: 0, kind: input, shape index: {}]   ;;  %s215_s1 = inlined_call_operand.vmem [shape: f32[10,100], index: 1, kind: input, shape index: {}]   ;;  %s216_s2 = inlined_call_operand.vmem [shape: f32[1,100], index: 2, kind: input, shape index: {}]   ;;  %s217_s3 = inlined_call_operand.hbm [shape: f32[8,100], index: 3, kind: output, shape index: {}]  }
   0x1   :  { %v16_v0 = vld [vmem:[%s215_s1] sm:$0xff]  ;;  %v17_v1 = vld [vmem:[%s215_s1 + $0x8] sm:$0x3]  ;;  %132 = vmatprep.subr.bf16.mxu0 %v165_v2  ;;  %vm134_vm2 = vmpackc.low %vm29_vm0, %vm166_vm1  ;;  %v168_v4 = vmov 0.0  }
   0x2   :  { %v133_v3 = vpack.c.bf16 %v17_v1, %v16_v0  ;;  %129 = vmatprep.mubr.msk.f32.mxu0 %vm167_vm3, %v168_v4 }
   0x3   :  { %8 = vsyncpa [#allocation3], 0  ;;  %v15_v5 = vld [vmem:[%s214_s0] sm:$0xff]  ;;  %vm25_vm4 = vcmask 80896   ;;  %s169_s1 = smov [#allocation2]   ;;  %vm103_vm5 = vcmask 818176  }
   0x4   :  { %135 = vmatpush3.bf16.msk.msra.mxu0 %vm134_vm2, %v133_v3  ;;  %v119_v6 = vld [vmem:[%s216_s2] ss:$0 sm:$0xff]  ;;  %s111_s20 = sshll.u32 %s169_s1, 4  ;;  %s112_s20 = int_to_ptr.vmem [resolvable:$true] %s111_s20 }
   0x5   :  { %s141_s21 = scalar_lea.vmem %s112_s20, 128  ;;  %p146_p1 = scmp.lt.s32.totalorder %s112_s20, %s112_s20 }
   0x6   :  { %p142_p0 = scmp.ne.s32.totalorder %s112_s20, %s141_s21  ;;  %p147_p2 = scmp.lt.s32.totalorder %s141_s21, %s141_s21 }
   0x7   :  { %130 = vmatmul.mubr.msk.f32.vlgmr.msra.gmra.mrb[0].mxu0 %vm25_vm4, %v15_v5 }
   0x8   :  { %p148_p3 = por %p147_p2, %p146_p1 }
   0xa   :  { %p149_p4 = pnand %p148_p3, %p142_p0 }
  0xda   :  { %v99_v7 = vpop.f32.mrb[0].mxu0 }
  0xdb   :  { %v100_v8 = vadd.f32 %v119_v6, %v99_v7  ;;  %v131_v9 = vpop.f32.mrb[1].mxu0 }
  0xdd   :  { %104 = vst.msk [vmem:[#allocation2] sm:$0xff] %vm103_vm5, %v100_v8 }
  0xde   :  { %152 = shalt.err (!%p149_p4)
}
  0xdf   :  { %s153_s23 = scalar_lea.hbm %s217_s3, 128 }
  0xe0   :  { %p154_p5 = scmp.ne.s32.totalorder %s217_s3, %s153_s23  ;;  %p157_p6 = scmp.lt.u32.totalorder %s153_s23, %s217_s3 }
  0xe2   :  { %p159_p7 = pnand %p157_p6, %p154_p5 }
  0xe4   :  { %162 = shalt.err (!%p159_p7)
}
  0xe5   :  { %114 = dma.vmem_to_hbm [thread:$0]  %s112_s20, 128, %s217_s3, [#allocation3]  }
  0xe6   :  { %163 = dma.done.wait [#allocation3], 128  }
  0xe7   :  { %164 = vsyncadd [#allocation3], 4294967168 }
  0xe8   :  { %118 = vsyncpa [#allocation3], 1 }

</bundles_post_ra>
